<compile_context>
chip_gen: v5e
topology: v5e:2x2
jax: 0.10.0
libtpu: 0.0.40
codegen_flags: <defaults>
</compile_context>

<pallas_src>
import functools

import jax
import jax.numpy as jnp
import numpy as np
from jax.experimental import pallas as pl
from jax.experimental.pallas import tpu as pltpu

LN_EPS = 1e-5  # PyTorch nn.LayerNorm default


def _round_up(a, b):
    return (a + b - 1) // b * b


def _masked_layernorm(v, g, b, true_d):
    """LayerNorm over the last dim, where lanes >= true_d are known to be 0."""
    inv_d = 1.0 / float(true_d)
    mean = jnp.sum(v, axis=-1, keepdims=True) * inv_d          # zeros in padding
    xc = v - mean
    if v.shape[-1] != true_d:
        lane = jax.lax.broadcasted_iota(jnp.int32, v.shape, 1)
        xc = jnp.where(lane < true_d, xc, 0.0)                 # keep var exact
    var = jnp.sum(xc * xc, axis=-1, keepdims=True) * inv_d
    return xc * jax.lax.rsqrt(var + LN_EPS) * g + b


def project_kernel(x_ref,
                   w_proj_ref, b_proj_ref,
                   ln1_g_ref, ln1_b_ref, w_in_ref, b_in_ref,
                   ln2_g_ref, ln2_b_ref, w_h_ref, b_h_ref,
                   w_out_ref, b_out_ref,
                   o_ref,
                   *, in_d, m_d, mxu_dtype):
    xf = x_ref[...].astype(jnp.float32)

    # residual projection (in_d -> out_d) on the MXU
    residual = jnp.dot(xf.astype(mxu_dtype), w_proj_ref[...],
                       preferred_element_type=jnp.float32) + b_proj_ref[...]

    # layer_in: LayerNorm -> Dropout(identity, eval) -> Linear -> ReLU
    # TODO(synk): training-mode Dropout(0.2) not implemented (inference semantics).
    h = _masked_layernorm(xf, ln1_g_ref[...], ln1_b_ref[...], in_d)
    h = jnp.dot(h.astype(mxu_dtype), w_in_ref[...],
                preferred_element_type=jnp.float32) + b_in_ref[...]
    h = jnp.maximum(h, 0.0)

    # layer_hidden[0]: LayerNorm -> Linear -> ReLU
    h = _masked_layernorm(h, ln2_g_ref[...], ln2_b_ref[...], m_d)
    h = jnp.dot(h.astype(mxu_dtype), w_h_ref[...],
                preferred_element_type=jnp.float32) + b_h_ref[...]
    h = jnp.maximum(h, 0.0)

    # layer_out
    out = jnp.dot(h.astype(mxu_dtype), w_out_ref[...],
                  preferred_element_type=jnp.float32) + b_out_ref[...]

    o_ref[...] = (residual + out).astype(o_ref.dtype)


def project_forward(x, params, *, tm=256, mxu_dtype=jnp.float32):
    """x: (N, in_d) float32.  params: dict of weights (see init_params).

    tm: row tile (>=128 recommended on v5e, >=256 on v6e/v7x).
    mxu_dtype: dtype for matmul operands (jnp.bfloat16 recommended on v6e/v7x);
               LayerNorm / biases / accumulation stay float32.
    """
    N, in_d = x.shape
    m_d = params["w_in"].shape[1]
    out_d = params["w_out"].shape[1]

    # Lane-dense padded feature dims (multiples of 128).
    in_p = _round_up(in_d, 128)
    m_p = _round_up(m_d, 128)
    out_p = _round_up(out_d, 128)

    # Row tile: multiple of 8 sublanes, capped by (padded) N so tiny batches
    # don't allocate a mostly-empty tile.  N is padded up to a multiple of tm.
    tm = _round_up(max(8, min(tm, _round_up(N, 8))), 8)
    n_p = _round_up(N, tm)

    f32 = jnp.float32

    def pad2(a, rows, cols, dtype):
        a = a.astype(dtype)
        return jnp.pad(a, ((0, rows - a.shape[0]), (0, cols - a.shape[1])))

    x_p    = pad2(x, n_p, in_p, x.dtype)
    w_proj = pad2(params["w_proj"], in_p, out_p, mxu_dtype)
    b_proj = pad2(params["b_proj"], 1, out_p, f32)
    ln1_g  = pad2(params["ln1_g"], 1, in_p, f32)
    ln1_b  = pad2(params["ln1_b"], 1, in_p, f32)
    w_in   = pad2(params["w_in"], in_p, m_p, mxu_dtype)
    b_in   = pad2(params["b_in"], 1, m_p, f32)
    ln2_g  = pad2(params["ln2_g"], 1, m_p, f32)
    ln2_b  = pad2(params["ln2_b"], 1, m_p, f32)
    w_h    = pad2(params["w_h"], m_p, m_p, mxu_dtype)
    b_h    = pad2(params["b_h"], 1, m_p, f32)
    w_out  = pad2(params["w_out"], m_p, out_p, mxu_dtype)
    b_out  = pad2(params["b_out"], 1, out_p, f32)

    # Every weight/bias is small -> keep fully resident (block = full array).
    def full(shape):
        return pl.BlockSpec(shape, lambda i: tuple(0 for _ in shape))

    grid_spec = pltpu.PrefetchScalarGridSpec(
        num_scalar_prefetch=0,
        grid=(n_p // tm,),
        in_specs=[
            pl.BlockSpec((tm, in_p), lambda i: (i, 0)),       # x tile
            full((in_p, out_p)), full((1, out_p)),            # proj
            full((1, in_p)), full((1, in_p)),                 # LN1 gamma/beta
            full((in_p, m_p)), full((1, m_p)),                # layer_in linear
            full((1, m_p)), full((1, m_p)),                   # LN2 gamma/beta
            full((m_p, m_p)), full((1, m_p)),                 # hidden linear
            full((m_p, out_p)), full((1, out_p)),             # layer_out
        ],
        out_specs=pl.BlockSpec((tm, out_p), lambda i: (i, 0)),
    )

    operands = (x_p,
                w_proj, b_proj,
                ln1_g, ln1_b, w_in, b_in,
                ln2_g, ln2_b, w_h, b_h,
                w_out, b_out)

    def _nbytes(a):
        return a.size * a.dtype.itemsize

    cost = pl.CostEstimate(
        flops=2 * n_p * (in_p * out_p + in_p * m_p + m_p * m_p + m_p * out_p),
        transcendentals=2 * n_p,  # two rsqrt per row
        bytes_accessed=sum(_nbytes(a) for a in operands) + n_p * out_p * 4,
    )

    kernel = functools.partial(project_kernel,
                               in_d=in_d, m_d=m_d, mxu_dtype=mxu_dtype)

    out_padded = pl.pallas_call(
        kernel,
        out_shape=jax.ShapeDtypeStruct((n_p, out_p), jnp.float32),
        grid_spec=grid_spec,
        compiler_params=pltpu.CompilerParams(
            dimension_semantics=("parallel",)),
        cost_estimate=cost,
    )(*operands)

    return out_padded[:N, :out_d].astype(x.dtype)


def _init_linear(key, in_f, out_f):
    # custom Linear init from the module: U(-b, b), b = sqrt(3 / fan_avg); bias = 0
    bound = np.sqrt(3.0 / ((in_f + out_f) / 2.0))
    w = jax.random.uniform(key, (in_f, out_f), jnp.float32, -bound, bound)  # (in, out)
    b = jnp.zeros((1, out_f), jnp.float32)
    return w, b


def init_params(key, in_d, out_d, m_d):
    k_in, k_h, k_out, k_proj = jax.random.split(key, 4)
    w_in, b_in = _init_linear(k_in, in_d, m_d)
    w_h, b_h = _init_linear(k_h, m_d, m_d)
    w_out, b_out = _init_linear(k_out, m_d, out_d)
    w_proj, b_proj = _init_linear(k_proj, in_d, out_d)
    return dict(
        ln1_g=jnp.ones((1, in_d), jnp.float32), ln1_b=jnp.zeros((1, in_d), jnp.float32),
        ln2_g=jnp.ones((1, m_d), jnp.float32), ln2_b=jnp.zeros((1, m_d), jnp.float32),
        w_in=w_in, b_in=b_in, w_h=w_h, b_h=b_h,
        w_out=w_out, b_out=b_out, w_proj=w_proj, b_proj=b_proj,
    )


def project_ref(x, p):
    """Pure-JAX reference (same math as the PyTorch module in eval mode)."""
    def ln(v, g, b):
        mu = jnp.mean(v, -1, keepdims=True)
        var = jnp.mean((v - mu) ** 2, -1, keepdims=True)
        return (v - mu) * jax.lax.rsqrt(var + LN_EPS) * g + b
    residual = x @ p["w_proj"] + p["b_proj"]
    h = jnp.maximum(ln(x, p["ln1_g"], p["ln1_b"]) @ p["w_in"] + p["b_in"], 0.0)
    h = jnp.maximum(ln(h, p["ln2_g"], p["ln2_b"]) @ p["w_h"] + p["b_h"], 0.0)
    return residual + (h @ p["w_out"] + p["b_out"])


if __name__ == "__main__":
    key = jax.random.PRNGKey(0)
    k_x, k_p = jax.random.split(key)

    # Deliberately non-aligned small shapes: N not a multiple of 8,
    # feature dims not multiples of 128 (exercises padding/masked-LN paths).
    N, in_d, m_d, out_d = 45, 32, 32, 16
    x = jax.random.normal(k_x, (N, in_d), jnp.float32)
    params = init_params(k_p, in_d, out_d, m_d)

    ref = project_ref(x, params)

    # f32 MXU operands: exact path, tight tolerance.
    out_f32 = jax.block_until_ready(
        project_forward(x, params, tm=256, mxu_dtype=jnp.float32))
    np.testing.assert_allclose(np.asarray(out_f32), np.asarray(ref),
                               rtol=1e-5, atol=1e-5)

    # bf16 MXU operands (recommended on v6e/v7x): looser tolerance.
    out_bf16 = jax.block_until_ready(
        project_forward(x, params, tm=256, mxu_dtype=jnp.bfloat16))
    np.testing.assert_allclose(np.asarray(out_bf16), np.asarray(ref),
                               rtol=5e-2, atol=5e-2)

    print("KERNEL_OK")
</pallas_src>

<mosaic_0001>
module attributes {stable_mosaic.version = 11 : i64} {
  func.func @project_kernel(%arg0: i32, %arg1: memref<48x128xf32, #tpu.memory_space<vmem>>, %arg2: memref<128x128xf32, #tpu.memory_space<vmem>>, %arg3: memref<1x128xf32, #tpu.memory_space<vmem>>, %arg4: memref<1x128xf32, #tpu.memory_space<vmem>>, %arg5: memref<1x128xf32, #tpu.memory_space<vmem>>, %arg6: memref<128x128xf32, #tpu.memory_space<vmem>>, %arg7: memref<1x128xf32, #tpu.memory_space<vmem>>, %arg8: memref<1x128xf32, #tpu.memory_space<vmem>>, %arg9: memref<1x128xf32, #tpu.memory_space<vmem>>, %arg10: memref<128x128xf32, #tpu.memory_space<vmem>>, %arg11: memref<1x128xf32, #tpu.memory_space<vmem>>, %arg12: memref<128x128xf32, #tpu.memory_space<vmem>>, %arg13: memref<1x128xf32, #tpu.memory_space<vmem>>, %arg14: memref<48x128xf32, #tpu.memory_space<vmem>>) attributes {dimension_semantics = [#tpu.dimension_semantics<parallel>], iteration_bounds = array<i64: 1>, scalar_prefetch = 0 : i64, scratch_operands = 0 : i64, tpu.core_type = #tpu.core_type<tc>, window_params = [{transform_indices = @transform_0, window_bounds = array<i64: 48, 128>}, {pipeline_mode = #tpu.pipeline_mode<synchronous>, transform_indices = @transform_1, window_bounds = array<i64: 128, 128>}, {pipeline_mode = #tpu.pipeline_mode<synchronous>, transform_indices = @transform_2, window_bounds = array<i64: 1, 128>}, {pipeline_mode = #tpu.pipeline_mode<synchronous>, transform_indices = @transform_3, window_bounds = array<i64: 1, 128>}, {pipeline_mode = #tpu.pipeline_mode<synchronous>, transform_indices = @transform_4, window_bounds = array<i64: 1, 128>}, {pipeline_mode = #tpu.pipeline_mode<synchronous>, transform_indices = @transform_5, window_bounds = array<i64: 128, 128>}, {pipeline_mode = #tpu.pipeline_mode<synchronous>, transform_indices = @transform_6, window_bounds = array<i64: 1, 128>}, {pipeline_mode = #tpu.pipeline_mode<synchronous>, transform_indices = @transform_7, window_bounds = array<i64: 1, 128>}, {pipeline_mode = #tpu.pipeline_mode<synchronous>, transform_indices = @transform_8, window_bounds = array<i64: 1, 128>}, {pipeline_mode = #tpu.pipeline_mode<synchronous>, transform_indices = @transform_9, window_bounds = array<i64: 128, 128>}, {pipeline_mode = #tpu.pipeline_mode<synchronous>, transform_indices = @transform_10, window_bounds = array<i64: 1, 128>}, {pipeline_mode = #tpu.pipeline_mode<synchronous>, transform_indices = @transform_11, window_bounds = array<i64: 128, 128>}, {pipeline_mode = #tpu.pipeline_mode<synchronous>, transform_indices = @transform_12, window_bounds = array<i64: 1, 128>}, {transform_indices = @transform_13, window_bounds = array<i64: 48, 128>}]} {
    %c0 = arith.constant 0 : index
    %c0_0 = arith.constant 0 : index
    %0 = vector.load %arg1[%c0, %c0_0] : memref<48x128xf32, #tpu.memory_space<vmem>>, vector<48x128xf32>
    %c0_1 = arith.constant 0 : index
    %c0_2 = arith.constant 0 : index
    %1 = vector.load %arg2[%c0_1, %c0_2] : memref<128x128xf32, #tpu.memory_space<vmem>>, vector<128x128xf32>
    %cst = arith.constant dense<0.000000e+00> : vector<48x128xf32>
    %2 = tpu.matmul %0, %1, %cst {dimension_numbers = #tpu.dot_dimension_numbers<[1], [0], [0], [1], [0, 0, 1, 1], [], []>} : vector<48x128xf32>, vector<128x128xf32>, vector<48x128xf32> -> vector<48x128xf32>
    %c0_3 = arith.constant 0 : index
    %c0_4 = arith.constant 0 : index
    %3 = vector.load %arg3[%c0_3, %c0_4] : memref<1x128xf32, #tpu.memory_space<vmem>>, vector<1x128xf32>
    %4 = vector.broadcast %3 : vector<1x128xf32> to vector<48x128xf32>
    %5 = arith.addf %2, %4 : vector<48x128xf32>
    %c0_5 = arith.constant 0 : index
    %c0_6 = arith.constant 0 : index
    %6 = vector.load %arg4[%c0_5, %c0_6] : memref<1x128xf32, #tpu.memory_space<vmem>>, vector<1x128xf32>
    %c0_7 = arith.constant 0 : index
    %c0_8 = arith.constant 0 : index
    %7 = vector.load %arg5[%c0_7, %c0_8] : memref<1x128xf32, #tpu.memory_space<vmem>>, vector<1x128xf32>
    %cst_9 = arith.constant dense<0.000000e+00> : vector<48xf32>
    %8 = vector.multi_reduction <add>, %0, %cst_9 [1] : vector<48x128xf32> to vector<48xf32>
    %9 = vector.shape_cast %8 : vector<48xf32> to vector<48x1xf32>
    %cst_10 = arith.constant 3.125000e-02 : f32
    %10 = vector.broadcast %cst_10 : f32 to vector<48x1xf32>
    %11 = arith.mulf %9, %10 : vector<48x1xf32>
    %12 = vector.broadcast %11 : vector<48x1xf32> to vector<48x128xf32>
    %13 = arith.subf %0, %12 : vector<48x128xf32>
    %14 = tpu.iota {dimensions = array<i32: 1>} : vector<48x128xi32>
    %c32_i32 = arith.constant 32 : i32
    %15 = vector.broadcast %c32_i32 : i32 to vector<48x128xi32>
    %16 = arith.cmpi slt, %14, %15 : vector<48x128xi32>
    %cst_11 = arith.constant 0.000000e+00 : f32
    %17 = vector.broadcast %cst_11 : f32 to vector<48x128xf32>
    %18 = arith.select %16, %13, %17 : vector<48x128xi1>, vector<48x128xf32>
    %19 = arith.mulf %18, %18 : vector<48x128xf32>
    %cst_12 = arith.constant dense<0.000000e+00> : vector<48xf32>
    %20 = vector.multi_reduction <add>, %19, %cst_12 [1] : vector<48x128xf32> to vector<48xf32>
    %21 = vector.shape_cast %20 : vector<48xf32> to vector<48x1xf32>
    %cst_13 = arith.constant 3.125000e-02 : f32
    %22 = vector.broadcast %cst_13 : f32 to vector<48x1xf32>
    %23 = arith.mulf %21, %22 : vector<48x1xf32>
    %cst_14 = arith.constant 9.99999974E-6 : f32
    %24 = vector.broadcast %cst_14 : f32 to vector<48x1xf32>
    %25 = arith.addf %23, %24 : vector<48x1xf32>
    %26 = math.rsqrt %25 : vector<48x1xf32>
    %27 = vector.broadcast %26 : vector<48x1xf32> to vector<48x128xf32>
    %28 = arith.mulf %18, %27 : vector<48x128xf32>
    %29 = vector.broadcast %6 : vector<1x128xf32> to vector<48x128xf32>
    %30 = arith.mulf %28, %29 : vector<48x128xf32>
    %31 = vector.broadcast %7 : vector<1x128xf32> to vector<48x128xf32>
    %32 = arith.addf %30, %31 : vector<48x128xf32>
    %c0_15 = arith.constant 0 : index
    %c0_16 = arith.constant 0 : index
    %33 = vector.load %arg6[%c0_15, %c0_16] : memref<128x128xf32, #tpu.memory_space<vmem>>, vector<128x128xf32>
    %cst_17 = arith.constant dense<0.000000e+00> : vector<48x128xf32>
    %34 = tpu.matmul %32, %33, %cst_17 {dimension_numbers = #tpu.dot_dimension_numbers<[1], [0], [0], [1], [0, 0, 1, 1], [], []>} : vector<48x128xf32>, vector<128x128xf32>, vector<48x128xf32> -> vector<48x128xf32>
    %c0_18 = arith.constant 0 : index
    %c0_19 = arith.constant 0 : index
    %35 = vector.load %arg7[%c0_18, %c0_19] : memref<1x128xf32, #tpu.memory_space<vmem>>, vector<1x128xf32>
    %36 = vector.broadcast %35 : vector<1x128xf32> to vector<48x128xf32>
    %37 = arith.addf %34, %36 : vector<48x128xf32>
    %cst_20 = arith.constant 0.000000e+00 : f32
    %38 = vector.broadcast %cst_20 : f32 to vector<48x128xf32>
    %39 = arith.maximumf %37, %38 : vector<48x128xf32>
    %c0_21 = arith.constant 0 : index
    %c0_22 = arith.constant 0 : index
    %40 = vector.load %arg8[%c0_21, %c0_22] : memref<1x128xf32, #tpu.memory_space<vmem>>, vector<1x128xf32>
    %c0_23 = arith.constant 0 : index
    %c0_24 = arith.constant 0 : index
    %41 = vector.load %arg9[%c0_23, %c0_24] : memref<1x128xf32, #tpu.memory_space<vmem>>, vector<1x128xf32>
    %cst_25 = arith.constant dense<0.000000e+00> : vector<48xf32>
    %42 = vector.multi_reduction <add>, %39, %cst_25 [1] : vector<48x128xf32> to vector<48xf32>
    %43 = vector.shape_cast %42 : vector<48xf32> to vector<48x1xf32>
    %cst_26 = arith.constant 3.125000e-02 : f32
    %44 = vector.broadcast %cst_26 : f32 to vector<48x1xf32>
    %45 = arith.mulf %43, %44 : vector<48x1xf32>
    %46 = vector.broadcast %45 : vector<48x1xf32> to vector<48x128xf32>
    %47 = arith.subf %39, %46 : vector<48x128xf32>
    %48 = tpu.iota {dimensions = array<i32: 1>} : vector<48x128xi32>
    %c32_i32_27 = arith.constant 32 : i32
    %49 = vector.broadcast %c32_i32_27 : i32 to vector<48x128xi32>
    %50 = arith.cmpi slt, %48, %49 : vector<48x128xi32>
    %cst_28 = arith.constant 0.000000e+00 : f32
    %51 = vector.broadcast %cst_28 : f32 to vector<48x128xf32>
    %52 = arith.select %50, %47, %51 : vector<48x128xi1>, vector<48x128xf32>
    %53 = arith.mulf %52, %52 : vector<48x128xf32>
    %cst_29 = arith.constant dense<0.000000e+00> : vector<48xf32>
    %54 = vector.multi_reduction <add>, %53, %cst_29 [1] : vector<48x128xf32> to vector<48xf32>
    %55 = vector.shape_cast %54 : vector<48xf32> to vector<48x1xf32>
    %cst_30 = arith.constant 3.125000e-02 : f32
    %56 = vector.broadcast %cst_30 : f32 to vector<48x1xf32>
    %57 = arith.mulf %55, %56 : vector<48x1xf32>
    %cst_31 = arith.constant 9.99999974E-6 : f32
    %58 = vector.broadcast %cst_31 : f32 to vector<48x1xf32>
    %59 = arith.addf %57, %58 : vector<48x1xf32>
    %60 = math.rsqrt %59 : vector<48x1xf32>
    %61 = vector.broadcast %60 : vector<48x1xf32> to vector<48x128xf32>
    %62 = arith.mulf %52, %61 : vector<48x128xf32>
    %63 = vector.broadcast %40 : vector<1x128xf32> to vector<48x128xf32>
    %64 = arith.mulf %62, %63 : vector<48x128xf32>
    %65 = vector.broadcast %41 : vector<1x128xf32> to vector<48x128xf32>
    %66 = arith.addf %64, %65 : vector<48x128xf32>
    %c0_32 = arith.constant 0 : index
    %c0_33 = arith.constant 0 : index
    %67 = vector.load %arg10[%c0_32, %c0_33] : memref<128x128xf32, #tpu.memory_space<vmem>>, vector<128x128xf32>
    %cst_34 = arith.constant dense<0.000000e+00> : vector<48x128xf32>
    %68 = tpu.matmul %66, %67, %cst_34 {dimension_numbers = #tpu.dot_dimension_numbers<[1], [0], [0], [1], [0, 0, 1, 1], [], []>} : vector<48x128xf32>, vector<128x128xf32>, vector<48x128xf32> -> vector<48x128xf32>
    %c0_35 = arith.constant 0 : index
    %c0_36 = arith.constant 0 : index
    %69 = vector.load %arg11[%c0_35, %c0_36] : memref<1x128xf32, #tpu.memory_space<vmem>>, vector<1x128xf32>
    %70 = vector.broadcast %69 : vector<1x128xf32> to vector<48x128xf32>
    %71 = arith.addf %68, %70 : vector<48x128xf32>
    %cst_37 = arith.constant 0.000000e+00 : f32
    %72 = vector.broadcast %cst_37 : f32 to vector<48x128xf32>
    %73 = arith.maximumf %71, %72 : vector<48x128xf32>
    %c0_38 = arith.constant 0 : index
    %c0_39 = arith.constant 0 : index
    %74 = vector.load %arg12[%c0_38, %c0_39] : memref<128x128xf32, #tpu.memory_space<vmem>>, vector<128x128xf32>
    %cst_40 = arith.constant dense<0.000000e+00> : vector<48x128xf32>
    %75 = tpu.matmul %73, %74, %cst_40 {dimension_numbers = #tpu.dot_dimension_numbers<[1], [0], [0], [1], [0, 0, 1, 1], [], []>} : vector<48x128xf32>, vector<128x128xf32>, vector<48x128xf32> -> vector<48x128xf32>
    %c0_41 = arith.constant 0 : index
    %c0_42 = arith.constant 0 : index
    %76 = vector.load %arg13[%c0_41, %c0_42] : memref<1x128xf32, #tpu.memory_space<vmem>>, vector<1x128xf32>
    %77 = vector.broadcast %76 : vector<1x128xf32> to vector<48x128xf32>
    %78 = arith.addf %75, %77 : vector<48x128xf32>
    %79 = arith.addf %5, %78 : vector<48x128xf32>
    %c0_43 = arith.constant 0 : index
    %c0_44 = arith.constant 0 : index
    %80 = vector.load %arg14[%c0_43, %c0_44] : memref<48x128xf32, #tpu.memory_space<vmem>>, vector<48x128xf32>
    tpu.vector_store %arg14[%c0_43, %c0_44], %79 {strides = array<i32>} : memref<48x128xf32, #tpu.memory_space<vmem>>, vector<48x128xf32>,
    return
  }
  func.func @transform_0(%arg0: i32) -> (i32, i32) {
    %c0_i32 = arith.constant 0 : i32
    %c0_i32_0 = arith.constant 0 : i32
    return %arg0, %c0_i32 : i32, i32
  }
  func.func @transform_1(%arg0: i32) -> (i32, i32) {
    %c0_i32 = arith.constant 0 : i32
    %c0_i32_0 = arith.constant 0 : i32
    %c0_i32_1 = arith.constant 0 : i32
    return %c0_i32, %c0_i32_0 : i32, i32
  }
  func.func @transform_2(%arg0: i32) -> (i32, i32) {
    %c0_i32 = arith.constant 0 : i32
    %c0_i32_0 = arith.constant 0 : i32
    %c0_i32_1 = arith.constant 0 : i32
    return %c0_i32, %c0_i32_0 : i32, i32
  }
  func.func @transform_3(%arg0: i32) -> (i32, i32) {
    %c0_i32 = arith.constant 0 : i32
    %c0_i32_0 = arith.constant 0 : i32
    %c0_i32_1 = arith.constant 0 : i32
    return %c0_i32, %c0_i32_0 : i32, i32
  }
  func.func @transform_4(%arg0: i32) -> (i32, i32) {
    %c0_i32 = arith.constant 0 : i32
    %c0_i32_0 = arith.constant 0 : i32
    %c0_i32_1 = arith.constant 0 : i32
    return %c0_i32, %c0_i32_0 : i32, i32
  }
  func.func @transform_5(%arg0: i32) -> (i32, i32) {
    %c0_i32 = arith.constant 0 : i32
    %c0_i32_0 = arith.constant 0 : i32
    %c0_i32_1 = arith.constant 0 : i32
    return %c0_i32, %c0_i32_0 : i32, i32
  }
  func.func @transform_6(%arg0: i32) -> (i32, i32) {
    %c0_i32 = arith.constant 0 : i32
    %c0_i32_0 = arith.constant 0 : i32
    %c0_i32_1 = arith.constant 0 : i32
    return %c0_i32, %c0_i32_0 : i32, i32
  }
  func.func @transform_7(%arg0: i32) -> (i32, i32) {
    %c0_i32 = arith.constant 0 : i32
    %c0_i32_0 = arith.constant 0 : i32
    %c0_i32_1 = arith.constant 0 : i32
    return %c0_i32, %c0_i32_0 : i32, i32
  }
  func.func @transform_8(%arg0: i32) -> (i32, i32) {
    %c0_i32 = arith.constant 0 : i32
    %c0_i32_0 = arith.constant 0 : i32
    %c0_i32_1 = arith.constant 0 : i32
    return %c0_i32, %c0_i32_0 : i32, i32
  }
  func.func @transform_9(%arg0: i32) -> (i32, i32) {
    %c0_i32 = arith.constant 0 : i32
    %c0_i32_0 = arith.constant 0 : i32
    %c0_i32_1 = arith.constant 0 : i32
    return %c0_i32, %c0_i32_0 : i32, i32
  }
  func.func @transform_10(%arg0: i32) -> (i32, i32) {
    %c0_i32 = arith.constant 0 : i32
    %c0_i32_0 = arith.constant 0 : i32
    %c0_i32_1 = arith.constant 0 : i32
    return %c0_i32, %c0_i32_0 : i32, i32
  }
  func.func @transform_11(%arg0: i32) -> (i32, i32) {
    %c0_i32 = arith.constant 0 : i32
    %c0_i32_0 = arith.constant 0 : i32
    %c0_i32_1 = arith.constant 0 : i32
    return %c0_i32, %c0_i32_0 : i32, i32
  }
  func.func @transform_12(%arg0: i32) -> (i32, i32) {
    %c0_i32 = arith.constant 0 : i32
    %c0_i32_0 = arith.constant 0 : i32
    %c0_i32_1 = arith.constant 0 : i32
    return %c0_i32, %c0_i32_0 : i32, i32
  }
  func.func @transform_13(%arg0: i32) -> (i32, i32) {
    %c0_i32 = arith.constant 0 : i32
    %c0_i32_0 = arith.constant 0 : i32
    return %arg0, %c0_i32 : i32, i32
  }
}

</mosaic_0001>

<bundles_post_ra>
// kernel: tpu_custom_call.1
= control target key start
LH: loop header
LB: loop body
LE: loop exit
PB: predicated region body
PF: predicated region fallthrough
CT: control target
= control target key end

     0   :  { %18 = vsyncpa [#allocation3], 0  ;;  %s1196_s0 = inlined_call_operand.hbm [shape: f32[48,128], index: 0, kind: input, shape index: {}]   ;;  %s1197_s1 = inlined_call_operand.hbm [shape: f32[128,128], index: 1, kind: input, shape index: {}]   ;;  %s1198_s2 = inlined_call_operand.vmem [shape: f32[1,128], index: 2, kind: input, shape index: {}]   ;;  %s1199_s3 = inlined_call_operand.vmem [shape: f32[1,128], index: 3, kind: input, shape index: {}]   ;;  %s1200_s4 = inlined_call_operand.vmem [shape: f32[1,128], index: 4, kind: input, shape index: {}]   ;;  %s1201_s5 = inlined_call_operand.hbm [shape: f32[128,128], index: 5, kind: input, shape index: {}]   ;;  %s1202_s6 = inlined_call_operand.vmem [shape: f32[1,128], index: 6, kind: input, shape index: {}]   ;;  %s1203_s7 = inlined_call_operand.vmem [shape: f32[1,128], index: 7, kind: input, shape index: {}]   ;;  %s1204_s8 = inlined_call_operand.vmem [shape: f32[1,128], index: 8, kind: input, shape index: {}]   ;;  %s1205_s9 = inlined_call_operand.hbm [shape: f32[128,128], index: 9, kind: input, shape index: {}]   ;;  %s1206_s10 = inlined_call_operand.vmem [shape: f32[1,128], index: 10, kind: input, shape index: {}]   ;;  %s1207_s11 = inlined_call_operand.hbm [shape: f32[128,128], index: 11, kind: input, shape index: {}]   ;;  %s1208_s12 = inlined_call_operand.vmem [shape: f32[1,128], index: 12, kind: input, shape index: {}]   ;;  %s1209_s13 = inlined_call_operand.hbm [shape: f32[48,128], index: 13, kind: output, shape index: {}]  }
   0x1   :  { %19 = vsyncpa [#allocation6], 0 }
   0x2   :  { %20 = vsyncpa [#allocation9], 0 }
   0x3   :  { %21 = vsyncpa [#allocation4], 0  ;;  %s39_s27 = sshll.u32 %s1197_s1, 4  ;;  %s881_s28 = smov [#allocation5]   ;;  %s40_s27 = int_to_ptr.hbm [resolvable:$true] %s39_s27 }
   0x4   :  { %s41_s29 = sshll.u32 %s881_s28, 4  ;;  %s77_s15 = sshll.u32 %s1205_s9, 4  ;;  %s42_s29 = int_to_ptr.vmem [resolvable:$true] %s41_s29  ;;  %s78_s15 = int_to_ptr.hbm [resolvable:$true] %s77_s15 }
   0x5   :  { %s882_s16 = smov 128   ;;  %s883_s17 = smov 8  }
   0x6   :  { %47 = dma.hbm_to_vmem [thread:$0]  %s40_s27, 2048, %s42_s29, [#allocation6], %s882_s16, %s882_s16, %s883_s17  }
   0x7   :  { %s884_s18 = smov [#allocation8]   ;;  %s26_s1 = sshll.u32 %s1196_s0, 4  ;;  %s27_s1 = int_to_ptr.hbm [resolvable:$true] %s26_s1 }
   0x8   :  { %s79_s19 = sshll.u32 %s884_s18, 4  ;;  %s58_s23 = sshll.u32 %s1201_s5, 4  ;;  %s80_s19 = int_to_ptr.vmem [resolvable:$true] %s79_s19  ;;  %s59_s23 = int_to_ptr.hbm [resolvable:$true] %s58_s23 }
   0x9   :  { %85 = dma.hbm_to_vmem [thread:$0]  %s78_s15, 2048, %s80_s19, [#allocation9], %s882_s16, %s882_s16, %s883_s17  }
   0xa   :  { %s885_s24 = smov [#allocation2]   ;;  %s886_s26 = smov [#allocation7]  }
   0xb   :  { %s28_s25 = sshll.u32 %s885_s24, 4  ;;  %s60_s0 = sshll.u32 %s886_s26, 4  ;;  %s29_s25 = int_to_ptr.vmem [resolvable:$true] %s28_s25  ;;  %s61_s0 = int_to_ptr.vmem [resolvable:$true] %s60_s0 }
   0xc   :  { %34 = dma.hbm_to_vmem [thread:$0]  %s27_s1, 768, %s29_s25, [#allocation3], %s882_s16, %s882_s16, %s883_s17  }
   0xd   :  { %s92_s29 = sshll.u32 %s1207_s11, 4  ;;  %s887_s5 = smov [#allocation10]   ;;  %s93_s29 = int_to_ptr.hbm [resolvable:$true] %s92_s29 }
   0xe   :  { %66 = dma.hbm_to_vmem [thread:$0]  %s59_s23, 2048, %s61_s0, [#allocation6], %s882_s16, %s882_s16, %s883_s17  }
   0xf   :  { %s94_s30 = sshll.u32 %s887_s5, 4  ;;  %s95_s30 = int_to_ptr.vmem [resolvable:$true] %s94_s30 }
  0x10   :  { %100 = dma.hbm_to_vmem [thread:$0]  %s93_s29, 2048, %s95_s30, [#allocation9], %s882_s16, %s882_s16, %s883_s17  }
  0x11   :  { %873 = dma.done.wait [#allocation3], 768  }
  0x12   :  { %874 = vsyncadd [#allocation3], 4294966528 }
  0x13   :  { %875 = dma.done.wait [#allocation6], 4096  }
  0x14   :  { %876 = vsyncadd [#allocation6], 4294963200 }
  0x15   :  { %877 = dma.done.wait [#allocation9], 4096  }
  0x16   :  { %878 = vsyncadd [#allocation9], 4294963200  ;;  %v989_v0 = vld [vmem:[#allocation2 + $0x20] sm:$0xff]  ;;  %v991_v1 = vld [vmem:[#allocation2 + $0x10] sm:$0xff]  ;;  %v210_v8 = vlaneseq  ;;  %s674_s25 = sshll.u32 %s1209_s13, 4  ;;  %s675_s25 = int_to_ptr.hbm [resolvable:$true] %s674_s25 }
  0x17   :  { %v993_v2 = vld [vmem:[#allocation2] sm:$0xff]  ;;  %194 = vadd.xlane.f32.xlu2 %v989_v0  ;;  %190 = vadd.xlane.f32.xlu1 %v991_v1  ;;  %v998_v3 = vld [vmem:[#allocation2 + $0x28] sm:$0xff]  ;;  %v1000_v4 = vld [vmem:[#allocation2 + $0x18] sm:$0xff] }
  0x18   :  { %186 = vadd.xlane.f32.xlu0 %v993_v2  ;;  %v1002_v5 = vld [vmem:[#allocation2 + $0x8] sm:$0xff]  ;;  %v347_v7 = vld [vmem:[#allocation7 + $0x70] sm:$0xff]  ;;  %v1007_v9 = vand.u32 127, %v210_v8  ;;  %v346_v40 = vld [vmem:[#allocation7 + $0x68] sm:$0xff] }
  0x19   :  { %v348_v6 = vld [vmem:[#allocation7 + $0x78] sm:$0xff]  ;;  %v345_v41 = vld [vmem:[#allocation7 + $0x60] sm:$0xff]  ;;  %v343_v43 = vld [vmem:[#allocation7 + $0x50] sm:$0xff] }
  0x1a   :  { %353 = vmatpush.msra.mxu1 %v348_v6  ;;  %vm212_vm0 = vcmp.lt.s32.totalorder %v1007_v9, 32  ;;  %v344_v42 = vld [vmem:[#allocation7 + $0x58] sm:$0xff]  ;;  %v342_v44 = vld [vmem:[#allocation7 + $0x48] sm:$0xff]  ;;  %v341_v45 = vld [vmem:[#allocation7 + $0x40] sm:$0xff] }
  0x1b   :  { %v340_v46 = vld [vmem:[#allocation7 + $0x38] sm:$0xff]  ;;  %v339_v47 = vld [vmem:[#allocation7 + $0x30] sm:$0xff]  ;;  %v338_v48 = vld [vmem:[#allocation7 + $0x28] sm:$0xff] }
  0x1c   :  { %354 = vmatpush.msra.mxu1 %v347_v7  ;;  %v337_v49 = vld [vmem:[#allocation7 + $0x20] sm:$0xff]  ;;  %v336_v50 = vld [vmem:[#allocation7 + $0x18] sm:$0xff]  ;;  %v335_v51 = vld [vmem:[#allocation7 + $0x10] sm:$0xff] }
  0x1d   :  { %v334_v52 = vld [vmem:[#allocation7 + $0x8] sm:$0xff]  ;;  %v333_v53 = vld [vmem:[#allocation7] sm:$0xff]  ;;  %v546_v9 = vld [vmem:[#allocation8 + $0x30] sm:$0xff] }
  0x1e   :  { %355 = vmatpush.msra.mxu1 %v346_v40 }
  0x1f   :  { %196 = vadd.xlane.f32.xlu2 %v998_v3  ;;  %192 = vadd.xlane.f32.xlu1 %v1000_v4 }
  0x20   :  { %188 = vadd.xlane.f32.xlu0 %v1002_v5  ;;  %356 = vmatpush.msra.mxu1 %v345_v41 }
  0x22   :  { %357 = vmatpush.msra.mxu1 %v344_v42 }
  0x24   :  { %358 = vmatpush.msra.mxu1 %v343_v43 }
  0x26   :  { %359 = vmatpush.msra.mxu1 %v342_v44 }
  0x28   :  { %360 = vmatpush.msra.mxu1 %v341_v45 }
  0x2a   :  { %361 = vmatpush.msra.mxu1 %v340_v46 }
  0x2c   :  { %362 = vmatpush.msra.mxu1 %v339_v47 }
  0x2e   :  { %363 = vmatpush.msra.mxu1 %v338_v48 }
  0x30   :  { %364 = vmatpush.msra.mxu1 %v337_v49 }
  0x32   :  { %365 = vmatpush.msra.mxu1 %v336_v50 }
  0x34   :  { %366 = vmatpush.msra.mxu1 %v335_v51 }
  0x36   :  { %367 = vmatpush.msra.mxu1 %v334_v52 }
  0x38   :  { %368 = vmatpush.msra.mxu1 %v333_v53 }
  0x8a   :  { %v195_v10 = vpop.xlane.xlu2 %194  ;;  %v191_v11 = vpop.xlane.xlu1 %190 }
  0x8b   :  { %v200_v12 = vmul.f32 0.03125, %v191_v11  ;;  %v187_v13 = vpop.xlane.xlu0 %186  ;;  %v202_v26 = vmul.f32 0.03125, %v195_v10 }
  0x8c   :  { %v198_v14 = vmul.f32 0.03125, %v187_v13 }
  0x8d   :  { %v206_v15 = vsub.f32 %v991_v1, %v200_v12  ;;  %v208_v33 = vsub.f32 %v989_v0, %v202_v26 }
  0x8e   :  { %v204_v16 = vsub.f32 %v993_v2, %v198_v14 }
  0x8f   :  { %v1014_v17 = vsel %vm212_vm0, %v206_v15, 0.0  ;;  %v1048_v38 = vsel %vm212_vm0, %v208_v33, 0.0 }
  0x90   :  { %v221_v18 = vmul.f32 %v1014_v17, %v1014_v17  ;;  %v1020_v19 = vsel %vm212_vm0, %v204_v16, 0.0  ;;  %v223_v39 = vmul.f32 %v1048_v38, %v1048_v38 }
  0x91   :  { %v219_v20 = vmul.f32 %v1020_v19, %v1020_v19 }
  0x92   :  { %v197_v21 = vpop.xlane.xlu2 %196  ;;  %229 = vadd.xlane.f32.xlu2 %v221_v18  ;;  %v193_v22 = vpop.xlane.xlu1 %192 }
  0x93   :  { %v203_v23 = vmul.f32 0.03125, %v197_v21  ;;  %v201_v24 = vmul.f32 0.03125, %v193_v22  ;;  %225 = vadd.xlane.f32.xlu0 %v219_v20  ;;  %v189_v25 = vpop.xlane.xlu0 %188 }
  0x94   :  { %v199_v27 = vmul.f32 0.03125, %v189_v25 }
  0x95   :  { %v209_v28 = vsub.f32 %v998_v3, %v203_v23  ;;  %v207_v29 = vsub.f32 %v1000_v4, %v201_v24 }
  0x96   :  { %v205_v30 = vsub.f32 %v1002_v5, %v199_v27 }
  0x97   :  { %v1029_v31 = vsel %vm212_vm0, %v209_v28, 0.0  ;;  %v1033_v32 = vsel %vm212_vm0, %v207_v29, 0.0 }
  0x98   :  { %v224_v34 = vmul.f32 %v1029_v31, %v1029_v31  ;;  %v222_v35 = vmul.f32 %v1033_v32, %v1033_v32  ;;  %v1042_v36 = vsel %vm212_vm0, %v205_v30, 0.0  ;;  %v1063_v30 = vld [vmem:[%s1199_s3] ss:$0 sm:$0xff] }
  0x99   :  { %v220_v37 = vmul.f32 %v1042_v36, %v1042_v36 }
  0x9a   :  { %235 = vadd.xlane.f32.xlu2 %v224_v34 }
  0x9b   :  { %231 = vadd.xlane.f32.xlu0 %v222_v35  ;;  %227 = vadd.xlane.f32.xlu1 %v220_v37 }
  0xa3   :  { %233 = vadd.xlane.f32.xlu1 %v223_v39  ;;  %v1069_v39 = vld [vmem:[%s1200_s4] ss:$0 sm:$0xff] }
 0x105   :  { %v230_v54 = vpop.xlane.xlu2 %229 }
 0x106   :  { %v239_v55 = vmul.f32 0.03125, %v230_v54  ;;  %v226_v56 = vpop.xlane.xlu0 %225 }
 0x107   :  { %v237_v57 = vmul.f32 0.03125, %v226_v56 }
 0x108   :  { %v245_v58 = vadd.f32 1e-05, %v239_v55 }
 0x109   :  { %v243_v59 = vadd.f32 1e-05, %v237_v57 }
 0x10a   :  { %705 = vrsqrt.f32 %v245_v58  ;;  %vm275_vm4 = vweird.f32 %v245_v58 }
 0x10b   :  { %707 = vrsqrt.f32 %v243_v59  ;;  %vm255_vm2 = vweird.f32 %v243_v59 }
 0x10d   :  { %v236_v16 = vpop.xlane.xlu2 %235 }
 0x10e   :  { %v228_v60 = vpop.xlane.xlu1 %227  ;;  %v232_v61 = vpop.xlane.xlu0 %231  ;;  %v242_v23 = vmul.f32 0.03125, %v236_v16 }
 0x10f   :  { %v238_v62 = vmul.f32 0.03125, %v228_v60  ;;  %v240_v63 = vmul.f32 0.03125, %v232_v61 }
 0x110   :  { %v1052_v6 = vpop.eup %705  ;;  %v248_v35 = vadd.f32 1e-05, %v242_v23 }
 0x111   :  { %v708_v7 = vpop.eup %707  ;;  %v244_v8 = vadd.f32 1e-05, %v238_v62  ;;  %v1054_v10 = vadd.f32 1e-05, %v240_v63  ;;  %v270_v11 = vmul.f32 %v1052_v6, %v245_v58  ;;  %vm276_vm5 = vweird.f32 %v1052_v6 }
 0x112   :  { %v250_v12 = vmul.f32 %v708_v7, %v243_v59  ;;  %vm256_vm1 = vweird.f32 %v708_v7  ;;  %vm1075_vm8 = vmor %vm275_vm4, %vm276_vm5 }
 0x113   :  { %709 = vrsqrt.f32 %v244_v8  ;;  %v271_v14 = vmul.f32 %v1052_v6, %v270_v11  ;;  %vm257_vm3 = vmor %vm255_vm2, %vm256_vm1  ;;  %vm265_vm7 = vweird.f32 %v244_v8  ;;  %vm285_vm10 = vweird.f32 %v1054_v10 }
 0x114   :  { %v251_v13 = vmul.f32 %v708_v7, %v250_v12  ;;  %711 = vrsqrt.f32 %v1054_v10  ;;  %vm305_vm1 = vweird.f32 %v248_v35 }
 0x115   :  { %v272_v26 = vmul.f32 0.5, %v271_v14 }
 0x116   :  { %v252_v15 = vmul.f32 0.5, %v251_v13  ;;  %v234_v18 = vpop.xlane.xlu1 %233 }
 0x117   :  { %v241_v20 = vmul.f32 0.03125, %v234_v18  ;;  %v273_v40 = vsub.f32 1.5, %v272_v26 }
 0x118   :  { %v253_v21 = vsub.f32 1.5, %v252_v15 }
 0x119   :  { %v710_v22 = vpop.eup %709  ;;  %v247_v24 = vadd.f32 1e-05, %v241_v20  ;;  %v274_v46 = vmul.f32 %v1052_v6, %v273_v40 }
 0x11a   :  { %v712_v25 = vpop.eup %711  ;;  %v254_v27 = vmul.f32 %v708_v7, %v253_v21  ;;  %v260_v28 = vmul.f32 %v710_v22, %v244_v8  ;;  %vm266_vm6 = vweird.f32 %v710_v22 }
 0x11b   :  { %v280_v29 = vmul.f32 %v712_v25, %v1054_v10  ;;  %713 = vrsqrt.f32 %v247_v24  ;;  %vm267_vm9 = vmor %vm265_vm7, %vm266_vm6  ;;  %v278_v55 = vsel %vm1075_vm8, %v1052_v6, %v274_v46  ;;  %vm286_vm11 = vweird.f32 %v712_v25 }
 0x11c   :  { %v261_v33 = vmul.f32 %v710_v22, %v260_v28  ;;  %v258_v34 = vsel %vm257_vm3, %v708_v7, %v254_v27  ;;  %715 = vrsqrt.f32 %v248_v35  ;;  %v311_v59 = vmul.f32 %v278_v55, %v1014_v17  ;;  %vm287_vm12 = vmor %vm285_vm10, %vm286_vm11 }
 0x11d   :  { %v309_v37 = vmul.f32 %v258_v34, %v1020_v19  ;;  %v281_v42 = vmul.f32 %v712_v25, %v280_v29  ;;  %vm295_vm13 = vweird.f32 %v247_v24 }
 0x11e   :  { %v262_v41 = vmul.f32 0.5, %v261_v33 }
 0x11f   :  { %v318_v43 = vmul.f32 %v1063_v30, %v309_v37  ;;  %v282_v49 = vmul.f32 0.5, %v281_v42 }
 0x120   :  { %v263_v44 = vsub.f32 1.5, %v262_v41 }
 0x121   :  { %v714_v45 = vpop.eup %713  ;;  %v327_v19 = vadd.f32 %v1069_v39, %v318_v43  ;;  %v283_v53 = vsub.f32 1.5, %v282_v49 }
 0x122   :  { %v264_v48 = vmul.f32 %v710_v22, %v263_v44  ;;  %v290_v50 = vmul.f32 %v714_v45, %v247_v24  ;;  %v716_v56 = vpop.eup %715  ;;  %vm296_vm14 = vweird.f32 %v714_v45 }
 0x123   :  { %369 = vmatmul.f32.vlgmr.msra.gmra.mxu1 %v327_v19  ;;  %v300_v60 = vmul.f32 %v716_v56, %v248_v35  ;;  %v284_v61 = vmul.f32 %v712_v25, %v283_v53  ;;  %vm297_vm15 = vmor %vm295_vm13, %vm296_vm14  ;;  %vm306_vm2 = vweird.f32 %v716_v56 }
 0x124   :  { %v268_v51 = vsel %vm267_vm9, %v710_v22, %v264_v48  ;;  %v291_v54 = vmul.f32 %v714_v45, %v290_v50  ;;  %vm307_vm3 = vmor %vm305_vm1, %vm306_vm2 }
 0x125   :  { %v310_v52 = vmul.f32 %v268_v51, %v1042_v36  ;;  %v320_v36 = vmul.f32 %v1063_v30, %v311_v59  ;;  %v301_v63 = vmul.f32 %v716_v56, %v300_v60  ;;  %v288_v6 = vsel %vm287_vm12, %v712_v25, %v284_v61 }
 0x126   :  { %v292_v62 = vmul.f32 0.5, %v291_v54  ;;  %v312_v10 = vmul.f32 %v288_v6, %v1033_v32 }
 0x127   :  { %v319_v57 = vmul.f32 %v1063_v30, %v310_v52  ;;  %v329_v8 = vadd.f32 %v1069_v39, %v320_v36  ;;  %v302_v11 = vmul.f32 0.5, %v301_v63 }
 0x128   :  { %v293_v7 = vsub.f32 1.5, %v292_v62  ;;  %v321_v17 = vmul.f32 %v1063_v30, %v312_v10 }
 0x129   :  { %v328_v58 = vadd.f32 %v1069_v39, %v319_v57  ;;  %v303_v13 = vsub.f32 1.5, %v302_v11  ;;  %v554_v57 = vld [vmem:[#allocation8 + $0x70] sm:$0xff] }
 0x12a   :  { %v294_v12 = vmul.f32 %v714_v45, %v293_v7  ;;  %v330_v15 = vadd.f32 %v1069_v39, %v321_v17 }
 0x12b   :  { %372 = vmatmul.f32.gmra.mxu1 %v328_v58  ;;  %v304_v18 = vmul.f32 %v716_v56, %v303_v13 }
 0x12c   :  { %v298_v14 = vsel %vm297_vm15, %v714_v45, %v294_v12 }
 0x12d   :  { %v313_v16 = vmul.f32 %v298_v14, %v1048_v38  ;;  %v308_v32 = vsel %vm307_vm3, %v716_v56, %v304_v18  ;;  %v699_v38 = vld [vmem:[%s1202_s6] ss:$0 sm:$0xff]  ;;  %v555_v56 = vld [vmem:[#allocation8 + $0x78] sm:$0xff] }
 0x12e   :  { %v314_v22 = vmul.f32 %v308_v32, %v1029_v31  ;;  %560 = vmatpush.msra.mxu2 %v555_v56  ;;  %v552_v32 = vld [vmem:[#allocation8 + $0x60] sm:$0xff]  ;;  %v1146_v56 = vld [vmem:[%s1204_s8] ss:$0 sm:$0xff] }
 0x12f   :  { %v322_v20 = vmul.f32 %v1063_v30, %v313_v16 }
 0x130   :  { %v323_v23 = vmul.f32 %v1063_v30, %v314_v22  ;;  %561 = vmatpush.msra.mxu2 %v554_v57  ;;  %v550_v22 = vld [vmem:[#allocation8 + $0x50] sm:$0xff] }
 0x131   :  { %v331_v21 = vadd.f32 %v1069_v39, %v322_v20  ;;  %v553_v20 = vld [vmem:[#allocation8 + $0x68] sm:$0xff] }
 0x132   :  { %v332_v24 = vadd.f32 %v1069_v39, %v323_v23  ;;  %562 = vmatpush.msra.mxu2 %v553_v20  ;;  %v549_v23 = vld [vmem:[#allocation8 + $0x48] sm:$0xff] }
 0x133   :  { %375 = vmatmul.f32.gmra.mxu1 %v329_v8 }
 0x134   :  { %563 = vmatpush.msra.mxu2 %v552_v32 }
 0x13b   :  { %378 = vmatmul.f32.gmra.mxu1 %v330_v15 }
 0x143   :  { %381 = vmatmul.f32.gmra.mxu1 %v331_v21  ;;  %v551_v21 = vld [vmem:[#allocation8 + $0x58] sm:$0xff] }
 0x144   :  { %564 = vmatpush.msra.mxu2 %v551_v21 }
 0x146   :  { %565 = vmatpush.msra.mxu2 %v550_v22 }
 0x148   :  { %566 = vmatpush.msra.mxu2 %v549_v23 }
 0x14b   :  { %384 = vmatmul.f32.gmra.mxu1 %v332_v24  ;;  %v548_v24 = vld [vmem:[#allocation8 + $0x40] sm:$0xff] }
 0x14c   :  { %567 = vmatpush.msra.mxu2 %v548_v24 }
 0x1a0   :  { %v370_v25 = vpop.f32.mrf.mxu1 }
 0x1a1   :  { %v371_v26 = vadd.f32 %v699_v38, %v370_v25  ;;  %v545_v25 = vld [vmem:[#allocation8 + $0x28] sm:$0xff] }
 0x1a3   :  { %v388_v27 = vmax.f32 %v371_v26, 0.0  ;;  %v544_v26 = vld [vmem:[#allocation8 + $0x20] sm:$0xff] }
 0x1a5   :  { %396 = vadd.xlane.f32.xlu0 %v388_v27 }
 0x1a8   :  { %v373_v28 = vpop.f32.mrf.mxu1 }
 0x1a9   :  { %v374_v29 = vadd.f32 %v699_v38, %v373_v28  ;;  %v542_v28 = vld [vmem:[#allocation8 + $0x10] sm:$0xff] }
 0x1ab   :  { %v389_v33 = vmax.f32 %v374_v29, 0.0  ;;  %v541_v29 = vld [vmem:[#allocation8 + $0x8] sm:$0xff] }
 0x1ad   :  { %398 = vadd.xlane.f32.xlu1 %v389_v33 }
 0x1b0   :  { %v376_v34 = vpop.f32.mrf.mxu1 }
 0x1b1   :  { %v377_v31 = vadd.f32 %v699_v38, %v376_v34 }
 0x1b3   :  { %v390_v35 = vmax.f32 %v377_v31, 0.0 }
 0x1b5   :  { %400 = vadd.xlane.f32.xlu2 %v390_v35 }
 0x1b8   :  { %v379_v30 = vpop.f32.mrf.mxu1 }
 0x1b9   :  { %v380_v37 = vadd.f32 %v699_v38, %v379_v30 }
 0x1bb   :  { %v391_v39 = vmax.f32 %v380_v37, 0.0 }
 0x1bd   :  { %402 = vadd.xlane.f32.xlu0 %v391_v39 }
 0x1c0   :  { %v382_v40 = vpop.f32.mrf.mxu1 }
 0x1c1   :  { %v383_v41 = vadd.f32 %v699_v38, %v382_v40 }
 0x1c3   :  { %v392_v42 = vmax.f32 %v383_v41, 0.0 }
 0x1c5   :  { %404 = vadd.xlane.f32.xlu1 %v392_v42 }
 0x1c8   :  { %v385_v43 = vpop.f32.mrf.mxu1 }
 0x1c9   :  { %v386_v44 = vadd.f32 %v699_v38, %v385_v43  ;;  %v547_v38 = vld [vmem:[#allocation8 + $0x38] sm:$0xff] }
 0x1ca   :  { %568 = vmatpush.msra.mxu2 %v547_v38  ;;  %v615_v38 = vld [vmem:[#allocation10 + $0x70] sm:$0xff] }
 0x1cb   :  { %v393_v45 = vmax.f32 %v386_v44, 0.0 }
 0x1cc   :  { %569 = vmatpush.msra.mxu2 %v546_v9 }
 0x1cd   :  { %406 = vadd.xlane.f32.xlu2 %v393_v45 }
 0x1ce   :  { %570 = vmatpush.msra.mxu2 %v545_v25 }
 0x1d0   :  { %571 = vmatpush.msra.mxu2 %v544_v26  ;;  %v144_v26 = vld [vmem:[#allocation5 + $0x78] sm:$0xff] }
 0x1d1   :  { %149 = vmatpush.msra.mxu0 %v144_v26  ;;  %v603_v26 = vld [vmem:[#allocation10 + $0x10] sm:$0xff] }
 0x218   :  { %v397_v19 = vpop.xlane.xlu0 %396 }
 0x219   :  { %v408_v46 = vmul.f32 0.03125, %v397_v19 }
 0x21b   :  { %v414_v47 = vsub.f32 %v388_v27, %v408_v46  ;;  %v543_v27 = vld [vmem:[#allocation8 + $0x18] sm:$0xff] }
 0x21c   :  { %572 = vmatpush.msra.mxu2 %v543_v27 }
 0x21d   :  { %v1103_v48 = vsel %vm212_vm0, %v414_v47, 0.0 }
 0x21e   :  { %v426_v49 = vmul.f32 %v1103_v48, %v1103_v48  ;;  %573 = vmatpush.msra.mxu2 %v542_v28  ;;  %v614_v28 = vld [vmem:[#allocation10 + $0x68] sm:$0xff] }
 0x220   :  { %v399_v50 = vpop.xlane.xlu1 %398  ;;  %432 = vadd.xlane.f32.xlu0 %v426_v49  ;;  %574 = vmatpush.msra.mxu2 %v541_v29  ;;  %v143_v29 = vld [vmem:[#allocation5 + $0x70] sm:$0xff] }
 0x221   :  { %v409_v51 = vmul.f32 0.03125, %v399_v50  ;;  %150 = vmatpush.msra.mxu0 %v143_v29  ;;  %v132_v29 = vld [vmem:[#allocation5 + $0x18] sm:$0xff] }
 0x223   :  { %v415_v52 = vsub.f32 %v389_v33, %v409_v51  ;;  %v540_v33 = vld [vmem:[#allocation8] sm:$0xff]  ;;  %v1140_v51 = vld [vmem:[%s1203_s7] ss:$0 sm:$0xff] }
 0x224   :  { %575 = vmatpush.msra.mxu2 %v540_v33 }
 0x225   :  { %v1109_v53 = vsel %vm212_vm0, %v415_v52, 0.0 }
 0x226   :  { %v427_v54 = vmul.f32 %v1109_v53, %v1109_v53 }
 0x228   :  { %v401_v55 = vpop.xlane.xlu2 %400  ;;  %434 = vadd.xlane.f32.xlu1 %v427_v54 }
 0x229   :  { %v410_v58 = vmul.f32 0.03125, %v401_v55 }
 0x22b   :  { %v416_v59 = vsub.f32 %v390_v35, %v410_v58 }
 0x22d   :  { %v1115_v60 = vsel %vm212_vm0, %v416_v59, 0.0 }
 0x22e   :  { %v428_v61 = vmul.f32 %v1115_v60, %v1115_v60 }
 0x230   :  { %436 = vadd.xlane.f32.xlu2 %v428_v61  ;;  %v403_v62 = vpop.xlane.xlu0 %402 }
 0x231   :  { %v411_v36 = vmul.f32 0.03125, %v403_v62 }
 0x233   :  { %v417_v63 = vsub.f32 %v391_v39, %v411_v36 }
 0x235   :  { %v1121_v7 = vsel %vm212_vm0, %v417_v63, 0.0 }
 0x236   :  { %v429_v6 = vmul.f32 %v1121_v7, %v1121_v7 }
 0x238   :  { %v405_v8 = vpop.xlane.xlu1 %404  ;;  %438 = vadd.xlane.f32.xlu0 %v429_v6 }
 0x239   :  { %v412_v10 = vmul.f32 0.03125, %v405_v8 }
 0x23b   :  { %v418_v11 = vsub.f32 %v392_v42, %v412_v10 }
 0x23d   :  { %v1127_v12 = vsel %vm212_vm0, %v418_v11, 0.0 }
 0x23e   :  { %v430_v17 = vmul.f32 %v1127_v12, %v1127_v12 }
 0x240   :  { %v407_v13 = vpop.xlane.xlu2 %406  ;;  %440 = vadd.xlane.f32.xlu1 %v430_v17 }
 0x241   :  { %v413_v14 = vmul.f32 0.03125, %v407_v13 }
 0x243   :  { %v419_v15 = vsub.f32 %v393_v45, %v413_v14 }
 0x245   :  { %v1133_v16 = vsel %vm212_vm0, %v419_v15, 0.0 }
 0x246   :  { %v431_v18 = vmul.f32 %v1133_v16, %v1133_v16 }
 0x248   :  { %442 = vadd.xlane.f32.xlu2 %v431_v18 }
 0x293   :  { %v433_v34 = vpop.xlane.xlu0 %432 }
 0x294   :  { %v444_v31 = vmul.f32 0.03125, %v433_v34 }
 0x296   :  { %v450_v35 = vadd.f32 1e-05, %v444_v31  ;;  %v142_v31 = vld [vmem:[#allocation5 + $0x68] sm:$0xff] }
 0x297   :  { %151 = vmatpush.msra.mxu0 %v142_v31  ;;  %v130_v31 = vld [vmem:[#allocation5 + $0x8] sm:$0xff] }
 0x298   :  { %717 = vrsqrt.f32 %v450_v35  ;;  %vm462_vm4 = vweird.f32 %v450_v35 }
 0x29b   :  { %v435_v30 = vpop.xlane.xlu1 %434 }
 0x29c   :  { %v445_v37 = vmul.f32 0.03125, %v435_v30 }
 0x29e   :  { %v718_v39 = vpop.eup %717  ;;  %v451_v40 = vadd.f32 1e-05, %v445_v37  ;;  %v613_v37 = vld [vmem:[#allocation10 + $0x60] sm:$0xff] }
 0x29f   :  { %v457_v41 = vmul.f32 %v718_v39, %v450_v35  ;;  %vm463_vm0 = vweird.f32 %v718_v39 }
 0x2a0   :  { %719 = vrsqrt.f32 %v451_v40  ;;  %vm464_vm5 = vmor %vm462_vm4, %vm463_vm0  ;;  %vm472_vm7 = vweird.f32 %v451_v40 }
 0x2a1   :  { %v458_v42 = vmul.f32 %v718_v39, %v457_v41 }
 0x2a3   :  { %v459_v43 = vmul.f32 0.5, %v458_v42  ;;  %v437_v44 = vpop.xlane.xlu2 %436 }
 0x2a4   :  { %v446_v45 = vmul.f32 0.03125, %v437_v44 }
 0x2a5   :  { %v460_v19 = vsub.f32 1.5, %v459_v43  ;;  %v612_v43 = vld [vmem:[#allocation10 + $0x58] sm:$0xff] }
 0x2a6   :  { %v720_v46 = vpop.eup %719  ;;  %v452_v47 = vadd.f32 1e-05, %v446_v45 }
 0x2a7   :  { %v461_v49 = vmul.f32 %v718_v39, %v460_v19  ;;  %v467_v50 = vmul.f32 %v720_v46, %v451_v40  ;;  %vm473_vm6 = vweird.f32 %v720_v46  ;;  %v141_v40 = vld [vmem:[#allocation5 + $0x60] sm:$0xff]  ;;  %v140_v19 = vld [vmem:[#allocation5 + $0x58] sm:$0xff] }
 0x2a8   :  { %721 = vrsqrt.f32 %v452_v47  ;;  %vm474_vm8 = vmor %vm472_vm7, %vm473_vm6  ;;  %vm482_vm10 = vweird.f32 %v452_v47  ;;  %152 = vmatpush.msra.mxu0 %v141_v40 }
 0x2a9   :  { %v468_v52 = vmul.f32 %v720_v46, %v467_v50  ;;  %v465_v54 = vsel %vm464_vm5, %v718_v39, %v461_v49  ;;  %v139_v50 = vld [vmem:[#allocation5 + $0x50] sm:$0xff] }
 0x2aa   :  { %v516_v55 = vmul.f32 %v465_v54, %v1103_v48  ;;  %v610_v54 = vld [vmem:[#allocation10 + $0x48] sm:$0xff]  ;;  %153 = vmatpush.msra.mxu0 %v140_v19 }
 0x2ab   :  { %v469_v57 = vmul.f32 0.5, %v468_v52  ;;  %v439_v58 = vpop.xlane.xlu0 %438 }
 0x2ac   :  { %v447_v59 = vmul.f32 0.03125, %v439_v58  ;;  %v525_v61 = vmul.f32 %v1140_v51, %v516_v55  ;;  %154 = vmatpush.msra.mxu0 %v139_v50 }
 0x2ad   :  { %v470_v62 = vsub.f32 1.5, %v469_v57  ;;  %v138_v57 = vld [vmem:[#allocation5 + $0x48] sm:$0xff] }
 0x2ae   :  { %v722_v36 = vpop.eup %721  ;;  %v453_v63 = vadd.f32 1e-05, %v447_v59  ;;  %v534_v6 = vadd.f32 %v1146_v56, %v525_v61  ;;  %v609_v59 = vld [vmem:[#allocation10 + $0x40] sm:$0xff]  ;;  %155 = vmatpush.msra.mxu0 %v138_v57 }
 0x2af   :  { %v471_v8 = vmul.f32 %v720_v46, %v470_v62  ;;  %v477_v10 = vmul.f32 %v722_v36, %v452_v47  ;;  %vm483_vm9 = vweird.f32 %v722_v36  ;;  %v137_v62 = vld [vmem:[#allocation5 + $0x40] sm:$0xff] }
 0x2b0   :  { %723 = vrsqrt.f32 %v453_v63  ;;  %576 = vmatmul.f32.vlgmr.msra.gmra.mxu2 %v534_v6  ;;  %vm484_vm11 = vmor %vm482_vm10, %vm483_vm9  ;;  %vm492_vm13 = vweird.f32 %v453_v63  ;;  %v608_v6 = vld [vmem:[#allocation10 + $0x38] sm:$0xff]  ;;  %156 = vmatpush.msra.mxu0 %v137_v62 }
 0x2b1   :  { %v478_v48 = vmul.f32 %v722_v36, %v477_v10  ;;  %v475_v11 = vsel %vm474_vm8, %v720_v46, %v471_v8  ;;  %v611_v46 = vld [vmem:[#allocation10 + $0x50] sm:$0xff]  ;;  %v136_v10 = vld [vmem:[#allocation5 + $0x38] sm:$0xff] }
 0x2b2   :  { %v517_v17 = vmul.f32 %v475_v11, %v1109_v53  ;;  %v616_v53 = vld [vmem:[#allocation10 + $0x78] sm:$0xff]  ;;  %157 = vmatpush.msra.mxu0 %v136_v10 }
 0x2b3   :  { %v479_v13 = vmul.f32 0.5, %v478_v48  ;;  %v441_v14 = vpop.xlane.xlu1 %440  ;;  %621 = vmatpush.msra.mxu3 %v616_v53  ;;  %v607_v48 = vld [vmem:[#allocation10 + $0x30] sm:$0xff] }
 0x2b4   :  { %v448_v15 = vmul.f32 0.03125, %v441_v14  ;;  %v526_v18 = vmul.f32 %v1140_v51, %v517_v17 }
 0x2b5   :  { %v480_v20 = vsub.f32 1.5, %v479_v13  ;;  %622 = vmatpush.msra.mxu3 %v615_v38  ;;  %v135_v13 = vld [vmem:[#allocation5 + $0x30] sm:$0xff] }
 0x2b6   :  { %v724_v32 = vpop.eup %723  ;;  %v1152_v21 = vadd.f32 1e-05, %v448_v15  ;;  %v535_v22 = vadd.f32 %v1146_v56, %v526_v18  ;;  %v606_v15 = vld [vmem:[#allocation10 + $0x28] sm:$0xff]  ;;  %158 = vmatpush.msra.mxu0 %v135_v13 }
 0x2b7   :  { %v481_v23 = vmul.f32 %v722_v36, %v480_v20  ;;  %v487_v24 = vmul.f32 %v724_v32, %v453_v63  ;;  %vm493_vm12 = vweird.f32 %v724_v32  ;;  %623 = vmatpush.msra.mxu3 %v614_v28  ;;  %v134_v20 = vld [vmem:[#allocation5 + $0x28] sm:$0xff] }
 0x2b8   :  { %725 = vrsqrt.f32 %v1152_v21  ;;  %579 = vmatmul.f32.gmra.mxu2 %v535_v22  ;;  %vm494_vm14 = vmor %vm492_vm13, %vm493_vm12  ;;  %vm502_vm1 = vweird.f32 %v1152_v21  ;;  %159 = vmatpush.msra.mxu0 %v134_v20  ;;  %v602_v28 = vld [vmem:[#allocation10 + $0x8] sm:$0xff] }
 0x2b9   :  { %v488_v9 = vmul.f32 %v724_v32, %v487_v24  ;;  %v485_v25 = vsel %vm484_vm11, %v722_v36, %v481_v23  ;;  %624 = vmatpush.msra.mxu3 %v613_v37  ;;  %v604_v24 = vld [vmem:[#allocation10 + $0x18] sm:$0xff] }
 0x2ba   :  { %v518_v27 = vmul.f32 %v485_v25, %v1115_v60 }
 0x2bb   :  { %v489_v33 = vmul.f32 0.5, %v488_v9  ;;  %v443_v34 = vpop.xlane.xlu2 %442  ;;  %625 = vmatpush.msra.mxu3 %v612_v43 }
 0x2bc   :  { %v449_v35 = vmul.f32 0.03125, %v443_v34  ;;  %v527_v30 = vmul.f32 %v1140_v51, %v518_v27  ;;  %v133_v27 = vld [vmem:[#allocation5 + $0x20] sm:$0xff]  ;;  %v131_v34 = vld [vmem:[#allocation5 + $0x10] sm:$0xff] }
 0x2bd   :  { %v490_v39 = vsub.f32 1.5, %v489_v33  ;;  %626 = vmatpush.msra.mxu3 %v611_v46  ;;  %160 = vmatpush.msra.mxu0 %v133_v27  ;;  %v601_v33 = vld [vmem:[#allocation10] sm:$0xff] }
 0x2be   :  { %v726_v41 = vpop.eup %725  ;;  %v1158_v42 = vadd.f32 1e-05, %v449_v35  ;;  %v536_v60 = vadd.f32 %v1146_v56, %v527_v30 }
 0x2bf   :  { %v491_v44 = vmul.f32 %v724_v32, %v490_v39  ;;  %v497_v45 = vmul.f32 %v726_v41, %v1152_v21  ;;  %vm503_vm15 = vweird.f32 %v726_v41  ;;  %627 = vmatpush.msra.mxu3 %v610_v54  ;;  %v605_v21 = vld [vmem:[#allocation10 + $0x20] sm:$0xff]  ;;  %161 = vmatpush.msra.mxu0 %v132_v29 }
 0x2c0   :  { %727 = vrsqrt.f32 %v1158_v42  ;;  %582 = vmatmul.f32.gmra.mxu2 %v536_v60  ;;  %vm504_vm2 = vmor %vm502_vm1, %vm503_vm15  ;;  %vm512_vm0 = vweird.f32 %v1158_v42 }
 0x2c1   :  { %v498_v47 = vmul.f32 %v726_v41, %v497_v45  ;;  %v495_v49 = vsel %vm494_vm14, %v724_v32, %v491_v44  ;;  %628 = vmatpush.msra.mxu3 %v609_v59  ;;  %162 = vmatpush.msra.mxu0 %v131_v34 }
 0x2c2   :  { %v519_v52 = vmul.f32 %v495_v49, %v1121_v7 }
 0x2c3   :  { %v499_v55 = vmul.f32 0.5, %v498_v47  ;;  %629 = vmatpush.msra.mxu3 %v608_v6  ;;  %163 = vmatpush.msra.mxu0 %v130_v31  ;;  %v703_v47 = vld [vmem:[%s1198_s2] ss:$0 sm:$0xff]  ;;  %s888_s2 = smov [#allocation11]  }
 0x2c4   :  { %v528_v58 = vmul.f32 %v1140_v51, %v519_v52 }
 0x2c5   :  { %v500_v61 = vsub.f32 1.5, %v499_v55  ;;  %630 = vmatpush.msra.mxu3 %v607_v48 }
 0x2c6   :  { %v728_v36 = vpop.eup %727  ;;  %v537_v63 = vadd.f32 %v1146_v56, %v528_v58 }
 0x2c7   :  { %v501_v8 = vmul.f32 %v726_v41, %v500_v61  ;;  %v507_v7 = vmul.f32 %v728_v36, %v1158_v42  ;;  %vm513_vm3 = vweird.f32 %v728_v36  ;;  %631 = vmatpush.msra.mxu3 %v606_v15 }
 0x2c8   :  { %585 = vmatmul.f32.gmra.mxu2 %v537_v63  ;;  %vm514_vm4 = vmor %vm512_vm0, %vm513_vm3 }
 0x2c9   :  { %v508_v11 = vmul.f32 %v728_v36, %v507_v7  ;;  %v505_v17 = vsel %vm504_vm2, %v726_v41, %v501_v8  ;;  %632 = vmatpush.msra.mxu3 %v605_v21 }
 0x2ca   :  { %v520_v14 = vmul.f32 %v505_v17, %v1127_v12 }
 0x2cb   :  { %v509_v18 = vmul.f32 0.5, %v508_v11  ;;  %633 = vmatpush.msra.mxu3 %v604_v24 }
 0x2cc   :  { %v529_v32 = vmul.f32 %v1140_v51, %v520_v14 }
 0x2cd   :  { %v510_v22 = vsub.f32 1.5, %v509_v18  ;;  %634 = vmatpush.msra.mxu3 %v603_v26 }
 0x2ce   :  { %v538_v23 = vadd.f32 %v1146_v56, %v529_v32 }
 0x2cf   :  { %v511_v53 = vmul.f32 %v728_v36, %v510_v22  ;;  %635 = vmatpush.msra.mxu3 %v602_v28 }
 0x2d0   :  { %588 = vmatmul.f32.gmra.mxu2 %v538_v23 }
 0x2d1   :  { %v515_v12 = vsel %vm514_vm4, %v728_v36, %v511_v53  ;;  %636 = vmatpush.msra.mxu3 %v601_v33 }
 0x2d2   :  { %v521_v38 = vmul.f32 %v515_v12, %v1133_v16  ;;  %v129_v16 = vld [vmem:[#allocation5] sm:$0xff] }
 0x2d3   :  { %164 = vmatpush.msra.mxu0 %v129_v16 }
 0x2d4   :  { %v530_v9 = vmul.f32 %v1140_v51, %v521_v38  ;;  %165 = vmatmul.f32.vlgmr.msra.gmra.mxu0 %v993_v2  ;;  %v702_v51 = vld [vmem:[%s1206_s10] ss:$0 sm:$0xff] }
 0x2d6   :  { %v539_v25 = vadd.f32 %v1146_v56, %v530_v9 }
 0x2d8   :  { %591 = vmatmul.f32.gmra.mxu2 %v539_v25 }
 0x2dc   :  { %168 = vmatmul.f32.gmra.mxu0 %v1002_v5 }
 0x2e4   :  { %171 = vmatmul.f32.gmra.mxu0 %v991_v1 }
 0x2ec   :  { %174 = vmatmul.f32.gmra.mxu0 %v1000_v4 }
 0x2f4   :  { %177 = vmatmul.f32.gmra.mxu0 %v989_v0 }
 0x2fc   :  { %180 = vmatmul.f32.gmra.mxu0 %v998_v3  ;;  %v704_v3 = vld [vmem:[%s1208_s12] ss:$0 sm:$0xff]  ;;  %s672_s12 = sshll.u32 %s888_s2, 4  ;;  %s673_s12 = int_to_ptr.vmem [resolvable:$true] %s672_s12 }
 0x333   :  { %v577_v56 = vpop.f32.mrf.mxu2 }
 0x334   :  { %v578_v35 = vadd.f32 %v702_v51, %v577_v56 }
 0x336   :  { %v595_v30 = vmax.f32 %v578_v35, 0.0 }
 0x338   :  { %637 = vmatmul.f32.vlgmr.msra.gmra.mxu3 %v595_v30 }
 0x33b   :  { %v580_v37 = vpop.f32.mrf.mxu2 }
 0x33c   :  { %v581_v39 = vadd.f32 %v702_v51, %v580_v37 }
 0x33e   :  { %v596_v40 = vmax.f32 %v581_v39, 0.0 }
 0x340   :  { %640 = vmatmul.f32.gmra.mxu3 %v596_v40 }
 0x343   :  { %v583_v2 = vpop.f32.mrf.mxu2 }
 0x344   :  { %v584_v5 = vadd.f32 %v702_v51, %v583_v2 }
 0x346   :  { %v597_v41 = vmax.f32 %v584_v5, 0.0 }
 0x348   :  { %643 = vmatmul.f32.gmra.mxu3 %v597_v41 }
 0x34b   :  { %v586_v1 = vpop.f32.mrf.mxu2 }
 0x34c   :  { %v587_v42 = vadd.f32 %v702_v51, %v586_v1 }
 0x34e   :  { %v598_v60 = vmax.f32 %v587_v42, 0.0 }
 0x350   :  { %646 = vmatmul.f32.gmra.mxu3 %v598_v60 }
 0x351   :  { %v166_v0 = vpop.f32.mrf.mxu0 }
 0x352   :  { %v167_v50 = vadd.f32 %v703_v47, %v166_v0 }
 0x353   :  { %v589_v43 = vpop.f32.mrf.mxu2 }
 0x354   :  { %v590_v44 = vadd.f32 %v702_v51, %v589_v43 }
 0x356   :  { %v599_v4 = vmax.f32 %v590_v44, 0.0 }
 0x358   :  { %649 = vmatmul.f32.gmra.mxu3 %v599_v4 }
 0x359   :  { %v169_v49 = vpop.f32.mrf.mxu0 }
 0x35a   :  { %v170_v58 = vadd.f32 %v703_v47, %v169_v49 }
 0x35b   :  { %v592_v45 = vpop.f32.mrf.mxu2 }
 0x35c   :  { %v593_v19 = vadd.f32 %v702_v51, %v592_v45 }
 0x35e   :  { %v600_v46 = vmax.f32 %v593_v19, 0.0 }
 0x360   :  { %652 = vmatmul.f32.gmra.mxu3 %v600_v46 }
 0x361   :  { %v172_v57 = vpop.f32.mrf.mxu0 }
 0x362   :  { %v173_v36 = vadd.f32 %v703_v47, %v172_v57 }
 0x369   :  { %v175_v6 = vpop.f32.mrf.mxu0 }
 0x36a   :  { %v176_v10 = vadd.f32 %v703_v47, %v175_v6 }
 0x371   :  { %v178_v17 = vpop.f32.mrf.mxu0 }
 0x372   :  { %v179_v14 = vadd.f32 %v703_v47, %v178_v17 }
 0x379   :  { %v181_v32 = vpop.f32.mrf.mxu0 }
 0x37a   :  { %v182_v21 = vadd.f32 %v703_v47, %v181_v32 }
 0x3bb   :  { %v638_v52 = vpop.f32.mrf.mxu3 }
 0x3bc   :  { %v639_v54 = vadd.f32 %v704_v3, %v638_v52 }
 0x3be   :  { %v656_v55 = vadd.f32 %v639_v54, %v167_v50 }
 0x3c0   :  { %662 = vst [vmem:[#allocation11] sm:$0xff] %v656_v55 }
 0x3c3   :  { %v641_v59 = vpop.f32.mrf.mxu3 }
 0x3c4   :  { %v642_v61 = vadd.f32 %v704_v3, %v641_v59 }
 0x3c6   :  { %v657_v62 = vadd.f32 %v642_v61, %v170_v58 }
 0x3c8   :  { %663 = vst [vmem:[#allocation11 + $0x8] sm:$0xff] %v657_v62 }
 0x3cb   :  { %v644_v63 = vpop.f32.mrf.mxu3 }
 0x3cc   :  { %v645_v8 = vadd.f32 %v704_v3, %v644_v63 }
 0x3ce   :  { %v658_v7 = vadd.f32 %v645_v8, %v173_v36 }
 0x3d0   :  { %664 = vst [vmem:[#allocation11 + $0x10] sm:$0xff] %v658_v7 }
 0x3d3   :  { %v647_v48 = vpop.f32.mrf.mxu3 }
 0x3d4   :  { %v648_v11 = vadd.f32 %v704_v3, %v647_v48 }
 0x3d6   :  { %v659_v13 = vadd.f32 %v648_v11, %v176_v10 }
 0x3d8   :  { %665 = vst [vmem:[#allocation11 + $0x18] sm:$0xff] %v659_v13 }
 0x3db   :  { %v650_v15 = vpop.f32.mrf.mxu3 }
 0x3dc   :  { %v651_v18 = vadd.f32 %v704_v3, %v650_v15 }
 0x3de   :  { %v660_v20 = vadd.f32 %v651_v18, %v179_v14 }
 0x3e0   :  { %666 = vst [vmem:[#allocation11 + $0x20] sm:$0xff] %v660_v20 }
 0x3e3   :  { %v653_v22 = vpop.f32.mrf.mxu3 }
 0x3e4   :  { %v654_v23 = vadd.f32 %v704_v3, %v653_v22 }
 0x3e6   :  { %v661_v24 = vadd.f32 %v654_v23, %v182_v21 }
 0x3e8   :  { %667 = vst [vmem:[#allocation11 + $0x28] sm:$0xff] %v661_v24 }
 0x3e9   :  { %680 = dma.vmem_to_hbm [thread:$0]  %s673_s12, 768, %s675_s25, [#allocation4], %s882_s16, %s882_s16, %s883_s17  }
 0x3ea   :  { %879 = dma.done.wait [#allocation4], 768  }
 0x3eb   :  { %880 = vsyncadd [#allocation4], 4294966528 }
 0x3ec   :  { %685 = vsyncpa [#allocation3], 1 }
 0x3ed   :  { %686 = vsyncpa [#allocation6], 1 }
 0x3ee   :  { %687 = vsyncpa [#allocation9], 1 }
 0x3ef   :  { %688 = vsyncpa [#allocation4], 1 }

</bundles_post_ra>
